<compile_context>
chip_gen: v5e
topology: v5e:2x2
jax: 0.10.0
libtpu: 0.0.40
codegen_flags: <defaults>
</compile_context>

<pallas_src>
import functools

import jax
import jax.numpy as jnp
from jax import lax
from jax.experimental import pallas as pl
from jax.experimental.pallas import tpu as pltpu


def _mpnn_kernel(x_ref,
                 w1_ref, b1_ref,
                 w2_ref, b2_ref,
                 w3_ref, b3_ref,
                 w4_ref, b4_ref,
                 w5_ref, b5_ref,
                 out_ref,
                 *, out_scaling: float, final_act, compute_dtype, act_dtype):
    def dense(w_ref, b_ref, h):
        # MXU matmul in compute_dtype with f32 accumulation; bias add in f32.
        return jnp.dot(w_ref[...], h.astype(compute_dtype),
                       preferred_element_type=jnp.float32) + b_ref[...]

    def relu(y):
        # act_dtype is f32 by default; optionally bf16 on v6e/v7x.
        return jnp.maximum(y, 0.0).astype(act_dtype)

    # Layer 1: contract x's feature axis directly.  x block is (T, in_size);
    # the MXU streams the transposed operand (same lowering as q @ k.T), so no
    # wrapper-side transpose / extra HBM pass over x is needed.
    x = x_ref[...].astype(compute_dtype)                       # (T, in_size)
    y1 = lax.dot_general(w1_ref[...], x,
                         dimension_numbers=(((1,), (1,)), ((), ())),
                         preferred_element_type=jnp.float32) + b1_ref[...]
    h = relu(y1)                                               # (32,  T)
    h = relu(dense(w2_ref, b2_ref, h))                         # (32,  T)
    h = relu(dense(w3_ref, b3_ref, h))                         # (128, T)
    h = relu(dense(w4_ref, b4_ref, h)) + h                     # residual (128, T)
    out = dense(w5_ref, b5_ref, h)                             # (1, T) lane-dense f32

    if final_act == "sigmoid":
        out = jax.nn.sigmoid(out)                              # EUP

    out_ref[...] = (out_scaling * out).astype(out_ref.dtype)


_PREFERRED_TILE = 2048   # amortizes per-step grid overhead (review item 1)
_MAX_TILE = 4096         # stays well inside v7x's 32 MiB scoped VMEM default


def _pick_batch_tile(batch: int, requested=None) -> int:
    """Pick a batch tile: multiple of 256 (or 128 / full batch as fallback),
    preferring >= 2 tiles so v7x's two TensorCores both get work."""
    if requested is not None:
        tile = min(int(requested), batch)
        if batch % tile != 0 or (tile != batch and tile % 128 != 0):
            raise ValueError(
                f"batch_tile={requested} must divide batch={batch} and be a "
                "multiple of 128 (or the full batch)")
        return tile

    def largest_divisible(limit, granule):
        t = (min(limit, batch) // granule) * granule
        while t >= granule and batch % t != 0:
            t -= granule
        return t

    limit = min(_PREFERRED_TILE, _MAX_TILE, batch)
    if batch >= 512:
        # Guarantee at least 2 tiles so the "parallel" grid axis shards across
        # both v7x TensorCores (no cost on the 1-TC v5e/v6e).
        limit = min(limit, batch // 2)
    tile = largest_divisible(limit, 256)
    if tile < 256:
        tile = largest_divisible(limit, 128)
    if tile < 128:
        tile = batch
    return tile


def mpnn_forward(x, params, *, out_scaling: float, final_act=None,
                 batch_tile=None, compute_dtype=jnp.bfloat16,
                 bf16_activations: bool = False):
    """x: (B, in_size) float32. params: dict of w1..w5 (out,in), b1..b5 (out,1).

    compute_dtype: MXU input dtype (bf16 default; float32 escape hatch for
    closer fidelity to the fp32 torch module).
    bf16_activations: keep inter-layer activations (bias/ReLU/residual) in
    bf16 — only worthwhile on v6e/v7x (bf16 VPU); leave False on v5e.
    """
    B, in_size = x.shape
    tile = _pick_batch_tile(B, batch_tile)
    num_tiles = B // tile
    act_dtype = compute_dtype if bf16_activations else jnp.float32

    # Pre-cast weights to the MXU dtype; biases stay f32 for the VPU adds.
    w = [params[f"w{i}"].astype(compute_dtype) for i in range(1, 6)]
    b = [params[f"b{i}"].astype(jnp.float32) for i in range(1, 6)]

    kernel = functools.partial(_mpnn_kernel,
                               out_scaling=float(out_scaling),
                               final_act=final_act,
                               compute_dtype=compute_dtype,
                               act_dtype=act_dtype)

    # Params live whole in VMEM: copied once, not double-buffered per step.
    # TODO(synk): at large num_tiles, verify from the generated copies that
    # these residents are indeed fetched only once (review item).
    vmem_resident = pl.BlockSpec(memory_space=pltpu.MemorySpace.VMEM)

    flops = 2 * B * (in_size * 32 + 32 * 32 + 32 * 128 + 128 * 128 + 128 * 1)
    param_bytes = sum(int(a.size) * a.dtype.itemsize for a in (w + b))
    cost = pl.CostEstimate(
        flops=int(flops),
        transcendentals=int(B if final_act == "sigmoid" else 0),
        bytes_accessed=int(B * in_size * 4 + B * 4 + param_bytes))

    out = pl.pallas_call(
        kernel,
        out_shape=jax.ShapeDtypeStruct((1, B), jnp.float32),
        grid_spec=pltpu.PrefetchScalarGridSpec(
            num_scalar_prefetch=0,
            grid=(num_tiles,),
            in_specs=[pl.BlockSpec((tile, in_size), lambda i: (i, 0))]
                     + [vmem_resident] * 10,
            out_specs=pl.BlockSpec((1, tile), lambda i: (0, i)),
        ),
        compiler_params=pltpu.CompilerParams(
            dimension_semantics=("parallel",),
            vmem_limit_bytes=32 * 1024 * 1024),
        cost_estimate=cost,
    )(x, w[0], b[0], w[1], b[1], w[2], b[2], w[3], b[3], w[4], b[4])

    # (1, B) -> (B, 1): same element order, pure metadata reshape.
    return out.reshape(B, 1)


def init_params(key, in_size: int, delta: float = 0.01):
    """Deterministic synthetic init.

    Weights are stored PyTorch-style (out_features, in_features); biases as
    (out_features, 1) columns.  Note: the reference module's
    `param = param * delta` in __init__ rebinds a local name and does not
    actually scale the parameters, so a plain small uniform init is used.
    """
    sizes = [(32, in_size), (32, 32), (128, 32), (128, 128), (1, 128)]
    params = {}
    for idx, (fan_out, fan_in) in enumerate(sizes, start=1):
        key, kw, kb = jax.random.split(key, 3)
        bound = 1.0 / float(jnp.sqrt(float(fan_in)))
        params[f"w{idx}"] = jax.random.uniform(
            kw, (fan_out, fan_in), jnp.float32, -bound, bound)
        params[f"b{idx}"] = jax.random.uniform(
            kb, (fan_out, 1), jnp.float32, -bound, bound)
    return params


def mpnn_reference(x, params, *, out_scaling, final_act=None,
                   compute_dtype=jnp.bfloat16, bf16_activations: bool = False):
    """Pure-JAX reference mirroring the kernel's precision policy exactly."""
    act_dtype = compute_dtype if bf16_activations else jnp.float32
    prec = (jax.lax.Precision.HIGHEST
            if compute_dtype == jnp.float32 else None)

    def dense(i, h):
        y = jnp.dot(params[f"w{i}"].astype(compute_dtype),
                    h.astype(compute_dtype),
                    preferred_element_type=jnp.float32, precision=prec)
        return y + params[f"b{i}"].astype(jnp.float32)

    def relu(y):
        return jnp.maximum(y, 0.0).astype(act_dtype)

    h = relu(dense(1, x.T))
    h = relu(dense(2, h))
    h = relu(dense(3, h))
    h = relu(dense(4, h)) + h
    out = dense(5, h)
    if final_act == "sigmoid":
        out = jax.nn.sigmoid(out)
    return (out_scaling * out).reshape(-1, 1)


if __name__ == "__main__":
    key = jax.random.PRNGKey(0)
    in_size = 16
    out_scaling = 2.5

    key, kx = jax.random.split(key)
    params = init_params(key, in_size)

    def check(batch, final_act, compute_dtype, bf16_acts, tol=2e-3):
        x = jax.random.normal(kx, (batch, in_size), jnp.float32)
        out = mpnn_forward(x, params, out_scaling=out_scaling,
                           final_act=final_act, compute_dtype=compute_dtype,
                           bf16_activations=bf16_acts)
        out = jax.block_until_ready(out)
        ref = mpnn_reference(x, params, out_scaling=out_scaling,
                             final_act=final_act, compute_dtype=compute_dtype,
                             bf16_activations=bf16_acts)
        assert out.shape == (batch, 1)
        assert jnp.allclose(out, ref, atol=tol, rtol=tol), (
            f"mismatch vs reference (batch={batch}, final_act={final_act}, "
            f"dtype={compute_dtype}, bf16_acts={bf16_acts})")

    # Small batch: auto-picker yields 2 parallel tiles of 256.
    check(512, None, jnp.bfloat16, False)
    check(512, "sigmoid", jnp.bfloat16, False)
    # fp32 escape hatch (closer fidelity to the fp32 torch module).
    check(512, None, jnp.float32, False)
    # Optional bf16-activation path (v6e/v7x).
    check(512, "sigmoid", jnp.bfloat16, True)
    # Larger batch: exercises the big tile (2048) with 2 parallel grid steps.
    check(4096, "sigmoid", jnp.bfloat16, False)

    print("KERNEL_OK")
</pallas_src>

<mosaic_0001>
module attributes {stable_mosaic.version = 11 : i64} {
  func.func @_mpnn_kernel(%arg0: i32, %arg1: memref<256x16xf32, #tpu.memory_space<vmem>>, %arg2: memref<32x16xbf16, #tpu.memory_space<vmem>>, %arg3: memref<32x1xf32, #tpu.memory_space<vmem>>, %arg4: memref<32x32xbf16, #tpu.memory_space<vmem>>, %arg5: memref<32x1xf32, #tpu.memory_space<vmem>>, %arg6: memref<128x32xbf16, #tpu.memory_space<vmem>>, %arg7: memref<128x1xf32, #tpu.memory_space<vmem>>, %arg8: memref<128x128xbf16, #tpu.memory_space<vmem>>, %arg9: memref<128x1xf32, #tpu.memory_space<vmem>>, %arg10: memref<1x128xbf16, #tpu.memory_space<vmem>>, %arg11: memref<1x1xf32, #tpu.memory_space<vmem>>, %arg12: memref<1x256xf32, #tpu.memory_space<vmem>>) attributes {dimension_semantics = [#tpu.dimension_semantics<parallel>], iteration_bounds = array<i64: 2>, scalar_prefetch = 0 : i64, scratch_operands = 0 : i64, tpu.core_type = #tpu.core_type<tc>, window_params = [{transform_indices = @transform_0, window_bounds = array<i64: 256, 16>}, {pipeline_mode = #tpu.pipeline_mode<synchronous>, transform_indices = @transform_1, window_bounds = array<i64: 32, 16>}, {pipeline_mode = #tpu.pipeline_mode<synchronous>, transform_indices = @transform_2, window_bounds = array<i64: 32, 1>}, {pipeline_mode = #tpu.pipeline_mode<synchronous>, transform_indices = @transform_3, window_bounds = array<i64: 32, 32>}, {pipeline_mode = #tpu.pipeline_mode<synchronous>, transform_indices = @transform_4, window_bounds = array<i64: 32, 1>}, {pipeline_mode = #tpu.pipeline_mode<synchronous>, transform_indices = @transform_5, window_bounds = array<i64: 128, 32>}, {pipeline_mode = #tpu.pipeline_mode<synchronous>, transform_indices = @transform_6, window_bounds = array<i64: 128, 1>}, {pipeline_mode = #tpu.pipeline_mode<synchronous>, transform_indices = @transform_7, window_bounds = array<i64: 128, 128>}, {pipeline_mode = #tpu.pipeline_mode<synchronous>, transform_indices = @transform_8, window_bounds = array<i64: 128, 1>}, {pipeline_mode = #tpu.pipeline_mode<synchronous>, transform_indices = @transform_9, window_bounds = array<i64: 1, 128>}, {pipeline_mode = #tpu.pipeline_mode<synchronous>, transform_indices = @transform_10, window_bounds = array<i64: 1, 1>}, {transform_indices = @transform_11, window_bounds = array<i64: 1, 256>}]} {
    %c0 = arith.constant 0 : index
    %c0_0 = arith.constant 0 : index
    %0 = vector.load %arg1[%c0, %c0_0] : memref<256x16xf32, #tpu.memory_space<vmem>>, vector<256x16xf32>
    %1 = arith.truncf %0 : vector<256x16xf32> to vector<256x16xbf16>
    %c0_1 = arith.constant 0 : index
    %c0_2 = arith.constant 0 : index
    %2 = vector.load %arg2[%c0_1, %c0_2] : memref<32x16xbf16, #tpu.memory_space<vmem>>, vector<32x16xbf16>
    %cst = arith.constant dense<0.000000e+00> : vector<32x256xf32>
    %3 = tpu.matmul %2, %1, %cst {dimension_numbers = #tpu.dot_dimension_numbers<[1], [1], [0], [0], [0, 0, 1, 0], [], []>} : vector<32x16xbf16>, vector<256x16xbf16>, vector<32x256xf32> -> vector<32x256xf32>
    %c0_3 = arith.constant 0 : index
    %c0_4 = arith.constant 0 : index
    %4 = vector.load %arg3[%c0_3, %c0_4] : memref<32x1xf32, #tpu.memory_space<vmem>>, vector<32x1xf32>
    %5 = vector.broadcast %4 : vector<32x1xf32> to vector<32x256xf32>
    %6 = arith.addf %3, %5 : vector<32x256xf32>
    %cst_5 = arith.constant 0.000000e+00 : f32
    %7 = vector.broadcast %cst_5 : f32 to vector<32x256xf32>
    %8 = arith.maximumf %6, %7 : vector<32x256xf32>
    %c0_6 = arith.constant 0 : index
    %c0_7 = arith.constant 0 : index
    %9 = vector.load %arg4[%c0_6, %c0_7] : memref<32x32xbf16, #tpu.memory_space<vmem>>, vector<32x32xbf16>
    %10 = arith.truncf %8 : vector<32x256xf32> to vector<32x256xbf16>
    %cst_8 = arith.constant dense<0.000000e+00> : vector<32x256xf32>
    %11 = tpu.matmul %9, %10, %cst_8 {dimension_numbers = #tpu.dot_dimension_numbers<[1], [0], [0], [1], [0, 0, 1, 1], [], []>} : vector<32x32xbf16>, vector<32x256xbf16>, vector<32x256xf32> -> vector<32x256xf32>
    %c0_9 = arith.constant 0 : index
    %c0_10 = arith.constant 0 : index
    %12 = vector.load %arg5[%c0_9, %c0_10] : memref<32x1xf32, #tpu.memory_space<vmem>>, vector<32x1xf32>
    %13 = vector.broadcast %12 : vector<32x1xf32> to vector<32x256xf32>
    %14 = arith.addf %11, %13 : vector<32x256xf32>
    %cst_11 = arith.constant 0.000000e+00 : f32
    %15 = vector.broadcast %cst_11 : f32 to vector<32x256xf32>
    %16 = arith.maximumf %14, %15 : vector<32x256xf32>
    %c0_12 = arith.constant 0 : index
    %c0_13 = arith.constant 0 : index
    %17 = vector.load %arg6[%c0_12, %c0_13] : memref<128x32xbf16, #tpu.memory_space<vmem>>, vector<128x32xbf16>
    %18 = arith.truncf %16 : vector<32x256xf32> to vector<32x256xbf16>
    %cst_14 = arith.constant dense<0.000000e+00> : vector<128x256xf32>
    %19 = tpu.matmul %17, %18, %cst_14 {dimension_numbers = #tpu.dot_dimension_numbers<[1], [0], [0], [1], [0, 0, 1, 1], [], []>} : vector<128x32xbf16>, vector<32x256xbf16>, vector<128x256xf32> -> vector<128x256xf32>
    %c0_15 = arith.constant 0 : index
    %c0_16 = arith.constant 0 : index
    %20 = vector.load %arg7[%c0_15, %c0_16] : memref<128x1xf32, #tpu.memory_space<vmem>>, vector<128x1xf32>
    %21 = vector.broadcast %20 : vector<128x1xf32> to vector<128x256xf32>
    %22 = arith.addf %19, %21 : vector<128x256xf32>
    %cst_17 = arith.constant 0.000000e+00 : f32
    %23 = vector.broadcast %cst_17 : f32 to vector<128x256xf32>
    %24 = arith.maximumf %22, %23 : vector<128x256xf32>
    %c0_18 = arith.constant 0 : index
    %c0_19 = arith.constant 0 : index
    %25 = vector.load %arg8[%c0_18, %c0_19] : memref<128x128xbf16, #tpu.memory_space<vmem>>, vector<128x128xbf16>
    %26 = arith.truncf %24 : vector<128x256xf32> to vector<128x256xbf16>
    %cst_20 = arith.constant dense<0.000000e+00> : vector<128x256xf32>
    %27 = tpu.matmul %25, %26, %cst_20 {dimension_numbers = #tpu.dot_dimension_numbers<[1], [0], [0], [1], [0, 0, 1, 1], [], []>} : vector<128x128xbf16>, vector<128x256xbf16>, vector<128x256xf32> -> vector<128x256xf32>
    %c0_21 = arith.constant 0 : index
    %c0_22 = arith.constant 0 : index
    %28 = vector.load %arg9[%c0_21, %c0_22] : memref<128x1xf32, #tpu.memory_space<vmem>>, vector<128x1xf32>
    %29 = vector.broadcast %28 : vector<128x1xf32> to vector<128x256xf32>
    %30 = arith.addf %27, %29 : vector<128x256xf32>
    %cst_23 = arith.constant 0.000000e+00 : f32
    %31 = vector.broadcast %cst_23 : f32 to vector<128x256xf32>
    %32 = arith.maximumf %30, %31 : vector<128x256xf32>
    %33 = arith.addf %32, %24 : vector<128x256xf32>
    %c0_24 = arith.constant 0 : index
    %c0_25 = arith.constant 0 : index
    %34 = vector.load %arg10[%c0_24, %c0_25] : memref<1x128xbf16, #tpu.memory_space<vmem>>, vector<1x128xbf16>
    %35 = arith.truncf %33 : vector<128x256xf32> to vector<128x256xbf16>
    %cst_26 = arith.constant dense<0.000000e+00> : vector<1x256xf32>
    %36 = tpu.matmul %34, %35, %cst_26 {dimension_numbers = #tpu.dot_dimension_numbers<[1], [0], [0], [1], [0, 0, 1, 1], [], []>} : vector<1x128xbf16>, vector<128x256xbf16>, vector<1x256xf32> -> vector<1x256xf32>
    %c0_27 = arith.constant 0 : index
    %c0_28 = arith.constant 0 : index
    %37 = vector.load %arg11[%c0_27, %c0_28] : memref<1x1xf32, #tpu.memory_space<vmem>>, vector<1x1xf32>
    %38 = vector.broadcast %37 : vector<1x1xf32> to vector<1x256xf32>
    %39 = arith.addf %36, %38 : vector<1x256xf32>
    %cst_29 = arith.constant 2.500000e+00 : f32
    %40 = vector.broadcast %cst_29 : f32 to vector<1x256xf32>
    %41 = arith.mulf %40, %39 : vector<1x256xf32>
    %c0_30 = arith.constant 0 : index
    %c0_31 = arith.constant 0 : index
    %42 = vector.load %arg12[%c0_30, %c0_31] : memref<1x256xf32, #tpu.memory_space<vmem>>, vector<1x256xf32>
    tpu.vector_store %arg12[%c0_30, %c0_31], %41 {strides = array<i32>} : memref<1x256xf32, #tpu.memory_space<vmem>>, vector<1x256xf32>,
    return
  }
  func.func @transform_0(%arg0: i32) -> (i32, i32) {
    %c0_i32 = arith.constant 0 : i32
    %c0_i32_0 = arith.constant 0 : i32
    return %arg0, %c0_i32 : i32, i32
  }
  func.func @transform_1(%arg0: i32) -> (i32, i32) {
    %c0_i32 = arith.constant 0 : i32
    %c0_i32_0 = arith.constant 0 : i32
    %c0_i32_1 = arith.constant 0 : i32
    return %c0_i32, %c0_i32_0 : i32, i32
  }
  func.func @transform_2(%arg0: i32) -> (i32, i32) {
    %c0_i32 = arith.constant 0 : i32
    %c0_i32_0 = arith.constant 0 : i32
    %c0_i32_1 = arith.constant 0 : i32
    return %c0_i32, %c0_i32_0 : i32, i32
  }
  func.func @transform_3(%arg0: i32) -> (i32, i32) {
    %c0_i32 = arith.constant 0 : i32
    %c0_i32_0 = arith.constant 0 : i32
    %c0_i32_1 = arith.constant 0 : i32
    return %c0_i32, %c0_i32_0 : i32, i32
  }
  func.func @transform_4(%arg0: i32) -> (i32, i32) {
    %c0_i32 = arith.constant 0 : i32
    %c0_i32_0 = arith.constant 0 : i32
    %c0_i32_1 = arith.constant 0 : i32
    return %c0_i32, %c0_i32_0 : i32, i32
  }
  func.func @transform_5(%arg0: i32) -> (i32, i32) {
    %c0_i32 = arith.constant 0 : i32
    %c0_i32_0 = arith.constant 0 : i32
    %c0_i32_1 = arith.constant 0 : i32
    return %c0_i32, %c0_i32_0 : i32, i32
  }
  func.func @transform_6(%arg0: i32) -> (i32, i32) {
    %c0_i32 = arith.constant 0 : i32
    %c0_i32_0 = arith.constant 0 : i32
    %c0_i32_1 = arith.constant 0 : i32
    return %c0_i32, %c0_i32_0 : i32, i32
  }
  func.func @transform_7(%arg0: i32) -> (i32, i32) {
    %c0_i32 = arith.constant 0 : i32
    %c0_i32_0 = arith.constant 0 : i32
    %c0_i32_1 = arith.constant 0 : i32
    return %c0_i32, %c0_i32_0 : i32, i32
  }
  func.func @transform_8(%arg0: i32) -> (i32, i32) {
    %c0_i32 = arith.constant 0 : i32
    %c0_i32_0 = arith.constant 0 : i32
    %c0_i32_1 = arith.constant 0 : i32
    return %c0_i32, %c0_i32_0 : i32, i32
  }
  func.func @transform_9(%arg0: i32) -> (i32, i32) {
    %c0_i32 = arith.constant 0 : i32
    %c0_i32_0 = arith.constant 0 : i32
    %c0_i32_1 = arith.constant 0 : i32
    return %c0_i32, %c0_i32_0 : i32, i32
  }
  func.func @transform_10(%arg0: i32) -> (i32, i32) {
    %c0_i32 = arith.constant 0 : i32
    %c0_i32_0 = arith.constant 0 : i32
    %c0_i32_1 = arith.constant 0 : i32
    return %c0_i32, %c0_i32_0 : i32, i32
  }
  func.func @transform_11(%arg0: i32) -> (i32, i32) {
    %c0_i32 = arith.constant 0 : i32
    %c0_i32_0 = arith.constant 0 : i32
    return %c0_i32, %arg0 : i32, i32
  }
}

</mosaic_0001>

<bundles_post_ra>
// kernel: tpu_custom_call.1
= control target key start
LH: loop header
LB: loop body
LE: loop exit
PB: predicated region body
PF: predicated region fallthrough
CT: control target
= control target key end

     0   :  { %s2482_s0 = inlined_call_operand.vmem [shape: f32[512,16], index: 0, kind: input, shape index: {}]   ;;  %s2483_s1 = inlined_call_operand.vmem [shape: bf16[32,16], index: 1, kind: input, shape index: {}]   ;;  %s2484_s2 = inlined_call_operand.vmem [shape: f32[32,1], index: 2, kind: input, shape index: {}]   ;;  %s2485_s3 = inlined_call_operand.vmem [shape: bf16[32,32], index: 3, kind: input, shape index: {}]   ;;  %s2486_s4 = inlined_call_operand.vmem [shape: f32[32,1], index: 4, kind: input, shape index: {}]   ;;  %s2487_s5 = inlined_call_operand.vmem [shape: bf16[128,32], index: 5, kind: input, shape index: {}]   ;;  %s2488_s6 = inlined_call_operand.vmem [shape: f32[128,1], index: 6, kind: input, shape index: {}]   ;;  %s2489_s7 = inlined_call_operand.vmem [shape: bf16[128,128], index: 7, kind: input, shape index: {}]   ;;  %s2490_s8 = inlined_call_operand.vmem [shape: f32[128,1], index: 8, kind: input, shape index: {}]   ;;  %s2491_s9 = inlined_call_operand.vmem [shape: bf16[1,128], index: 9, kind: input, shape index: {}]   ;;  %s2492_s10 = inlined_call_operand.<no memory space> [shape: f32[1,1], index: 10, kind: input, shape index: {}]   ;;  %s2493_s11 = inlined_call_operand.hbm [shape: f32[1,512], index: 11, kind: output, shape index: {}]  }
   0x1   :  { %v16_v0 = vstv %s2492_s10 }
   0x2   :  { %17 = vst [vmem:[#allocation2] sm:$0x1] %v16_v0 }
   0x3   :  { %18 = vsyncpa [#allocation4], 0 }
   0x4   :  { %20 = vsyncpa [#allocation4 + $0x1], 0  ;;  %s1765_s19 = smov 0   ;;  %s1767_s20 = smov 0  }
   0x5   :  { %s1769_s21 = smov 0   ;;  %s1771_s22 = smov 0  }
   0x6 LB: > { %s1786_s10 = sadd.s32 4294967295, %s1699_s22   ;;  %s1459_s23 = sadd.s32 4294967294, %s1699_s22   ;;  %s1699_s22 = sphi %s1771_s22, %s2572_s22   ;;  %s1695_s21 = sphi %s1769_s21, %s2571_s21   ;;  %s1691_s20 = sphi %s1767_s20, %s2570_s20   ;;  %s1687_s19 = sphi %s1765_s19, %s2569_s19  }
   0x7   : > { %s1790_s24 = sadd.s32 1, %s1699_s22   ;;  %s269_s25 = sadd.s32 1, %s1695_s21 }
   0x8   : > { %s266_s26 = ssub.s32 %s1699_s22, %s1790_s24  ;;  %p279_p0 = scmp.ne.s32.totalorder %s1695_s21, %s1691_s20 }
   0x9   : > { %p267_p1 = scmp.eq.s32.totalorder %s266_s26, 0  ;;  %p280_p2 = scmp.eq.s32.totalorder %s1786_s10, 1 }
   0xa   : > { %p285_p3 = scmp.ne.s32.totalorder %s1691_s20, %s1687_s19  ;;  %p286_p4 = scmp.eq.s32.totalorder %s1459_s23, 1 }
   0xb   : > { %s1801_s27 = scalar_select %p267_p1, %s1695_s21, %s269_s25  }
   0xc   : > { %p1803_p5 = por %p280_p2, %p279_p0  ;;  %p1807_p6 = por %p286_p4, %p285_p3 }
   0xd   : > { %p1462_p7 = scmp.ge.s32.totalorder %s1699_s22, 1  ;;  %p343_p8 = scmp.lt.s32.totalorder %s1699_s22, 3 }
   0xf   : > { %p344_p9 = pnand %p1462_p7, %p343_p8 }
  0x11   : > { %347 = sbr.rel (%p344_p9) target bundleno = 1145 (0x479), region = 64 }
  0x16   : > { %v445_v1 = vld [vmem:[%s2484_s2 + $0x10] sm:$0xff]  ;;  %v443_v2 = vld [vmem:[%s2484_s2] sm:$0xff]  ;;  %s1464_s15 = sshll.u32 %s1786_s10, 5  ;;  %v1701_v3 = vmov 0   ;;  %v446_v4 = vld [vmem:[%s2484_s2 + $0x18] sm:$0xff]  ;;  %vm477_vm0 = vcmask 130048  }
  0x17   : > { %1635 = vset.pattern.permute.xlu1 %v1701_v3  ;;  %1634 = vset.pattern.permute.xlu0 %v1701_v3  ;;  %p384_p10 = scmp.lt.s32.totalorder %s1464_s15, 63  ;;  %v444_v5 = vld [vmem:[%s2484_s2 + $0x8] sm:$0xff]  ;;  %v586_v20 = vld [vmem:[%s2486_s4] sm:$0xff]  ;;  %v708_v30 = vld [vmem:[%s2488_s6 + $0x78] sm:$0xff]  ;;  %vm620_vm1 = vcmask 261120   ;;  %s380_s23 = sand.u32 1, %s1691_s20  }
  0x18   : > { %459 = vperm.xlu0 %1634, %v445_v1   ;;  %449 = vperm.xlu1 %1635, %v443_v2   ;;  %v587_v21 = vld [vmem:[%s2486_s4 + $0x8] sm:$0xff]  ;;  %v705_v31 = vld [vmem:[%s2488_s6 + $0x60] sm:$0xff]  ;;  %v703_v40 = vld [vmem:[%s2488_s6 + $0x50] sm:$0xff]  ;;  %s1463_s25 = sshll.u32 %s380_s23, 1  ;;  %vm1376_vm2 = vcmask 1040384   ;;  %s1657_s26 = scalar_lea.hbm %s2493_s11, 4 }
  0x19   : > { %s2574_s15 = smov (!%p384_p10, %s1464_s15), 63  ;;  %1636 = vset.pattern.permute.xlu2 %v1701_v3  ;;  %v704_v41 = vld [vmem:[%s2488_s6 + $0x58] sm:$0xff]  ;;  %v702_v50 = vld [vmem:[%s2488_s6 + $0x48] sm:$0xff]  ;;  %v699_v51 = vld [vmem:[%s2488_s6 + $0x30] sm:$0xff]  ;;  %s382_s14 = scalar_lea.vmem [#allocation3], %s1463_s25 }
  0x1a   : > { %s1465_s16 = sshll.u32 %s2574_s15, 3  ;;  %v697_v60 = vld [vmem:[%s2488_s6 + $0x20] sm:$0xff]  ;;  %v698_v61 = vld [vmem:[%s2488_s6 + $0x28] sm:$0xff]  ;;  %s1397_s15 = sshll.u32 %s382_s14, 4  ;;  %s1398_s15 = int_to_ptr.vmem [resolvable:$true] %s1397_s15 }
  0x1b   : > { %s1829_s12 = scalar_lea.vmem %s2482_s0, %s1465_s16 }
  0x1c   : > { %v405_v6 = vld [vmem:[%s1829_s12 + $0x70] sm:$0xff]  ;;  %v406_v7 = vld [vmem:[%s1829_s12 + $0x78] sm:$0xff]  ;;  %v403_v12 = vld [vmem:[%s1829_s12 + $0x60] sm:$0xff] }
  0x1d   : > { %v421_v8 = vld [vmem:[%s1829_s12 + $0xf0] sm:$0xff]  ;;  %v430_v9 = vpack.c.bf16 %v406_v7, %v405_v6  ;;  %v422_v10 = vld [vmem:[%s1829_s12 + $0xf8] sm:$0xff]  ;;  %v404_v13 = vld [vmem:[%s1829_s12 + $0x68] sm:$0xff] }
  0x1e   : > { %v438_v11 = vpack.c.bf16 %v422_v10, %v421_v8  ;;  %v419_v15 = vld [vmem:[%s1829_s12 + $0xe0] sm:$0xff]  ;;  %v420_v16 = vld [vmem:[%s1829_s12 + $0xe8] sm:$0xff]  ;;  %v429_v18 = vpack.c.bf16 %v404_v13, %v403_v12  ;;  %v401_v24 = vld [vmem:[%s1829_s12 + $0x50] sm:$0xff] }
  0x1f   : > { %v506_v14 = vsel %vm477_vm0, %v430_v9, 0  ;;  %v437_v19 = vpack.c.bf16 %v420_v16, %v419_v15  ;;  %v402_v25 = vld [vmem:[%s1829_s12 + $0x58] sm:$0xff]  ;;  %v417_v26 = vld [vmem:[%s1829_s12 + $0xd0] sm:$0xff]  ;;  %v399_v34 = vld [vmem:[%s1829_s12 + $0x40] sm:$0xff] }
  0x20   : > { %464 = vperm.xlu0 %1634, %v446_v4   ;;  %454 = vperm.xlu1 %1635, %v444_v5   ;;  %v530_v17 = vsel %vm477_vm0, %v438_v11, 0  ;;  %v503_v22 = vsel %vm477_vm0, %v429_v18, 0  ;;  %v418_v27 = vld [vmem:[%s1829_s12 + $0xd8] sm:$0xff]  ;;  %v428_v28 = vpack.c.bf16 %v402_v25, %v401_v24  ;;  %v400_v35 = vld [vmem:[%s1829_s12 + $0x48] sm:$0xff]  ;;  %v415_v36 = vld [vmem:[%s1829_s12 + $0xc0] sm:$0xff] }
  0x21   : > { %532 = vmatpush.bf16.xpose.msra.mxu0 %v506_v14  ;;  %551 = vmatpush.bf16.xpose.msra.mxu1 %v530_v17  ;;  %v527_v23 = vsel %vm477_vm0, %v437_v19, 0  ;;  %v436_v29 = vpack.c.bf16 %v418_v27, %v417_v26  ;;  %v416_v37 = vld [vmem:[%s1829_s12 + $0xc8] sm:$0xff]  ;;  %v427_v38 = vpack.c.bf16 %v400_v35, %v399_v34  ;;  %v397_v44 = vld [vmem:[%s1829_s12 + $0x30] sm:$0xff]  ;;  %v398_v45 = vld [vmem:[%s1829_s12 + $0x38] sm:$0xff] }
  0x22   : > { %v500_v32 = vsel %vm477_vm0, %v428_v28, 0  ;;  %v435_v39 = vpack.c.bf16 %v416_v37, %v415_v36  ;;  %v413_v46 = vld [vmem:[%s1829_s12 + $0xb0] sm:$0xff]  ;;  %v414_v47 = vld [vmem:[%s1829_s12 + $0xb8] sm:$0xff]  ;;  %v426_v48 = vpack.c.bf16 %v398_v45, %v397_v44  ;;  %v395_v54 = vld [vmem:[%s1829_s12 + $0x20] sm:$0xff] }
  0x23   : > { %v524_v33 = vsel %vm477_vm0, %v436_v29, 0  ;;  %v497_v42 = vsel %vm477_vm0, %v427_v38, 0  ;;  %v434_v49 = vpack.c.bf16 %v414_v47, %v413_v46  ;;  %v396_v55 = vld [vmem:[%s1829_s12 + $0x28] sm:$0xff]  ;;  %v411_v56 = vld [vmem:[%s1829_s12 + $0xa0] sm:$0xff]  ;;  %v393_v0 = vld [vmem:[%s1829_s12 + $0x10] sm:$0xff] }
  0x24   : > { %v521_v43 = vsel %vm477_vm0, %v435_v39, 0  ;;  %v494_v52 = vsel %vm477_vm0, %v426_v48, 0  ;;  %v412_v57 = vld [vmem:[%s1829_s12 + $0xa8] sm:$0xff]  ;;  %v425_v58 = vpack.c.bf16 %v396_v55, %v395_v54  ;;  %v394_v1 = vld [vmem:[%s1829_s12 + $0x18] sm:$0xff]  ;;  %v409_v2 = vld [vmem:[%s1829_s12 + $0x90] sm:$0xff] }
  0x25   : > { %v518_v53 = vsel %vm477_vm0, %v434_v49, 0  ;;  %v433_v59 = vpack.c.bf16 %v412_v57, %v411_v56  ;;  %v410_v3 = vld [vmem:[%s1829_s12 + $0x98] sm:$0xff]  ;;  %v424_v4 = vpack.c.bf16 %v394_v1, %v393_v0  ;;  %v693_v7 = vld [vmem:[%s2488_s6] sm:$0xff]  ;;  %v392_v11 = vld [vmem:[%s1829_s12 + $0x8] sm:$0xff] }
  0x26   : > { %v491_v62 = vsel %vm477_vm0, %v425_v58, 0  ;;  %v432_v5 = vpack.c.bf16 %v410_v3, %v409_v2  ;;  %v696_v6 = vld [vmem:[%s2488_s6 + $0x18] sm:$0xff]  ;;  %v391_v10 = vld [vmem:[%s1829_s12] sm:$0xff]  ;;  %v408_v13 = vld [vmem:[%s1829_s12 + $0x88] sm:$0xff] }
  0x27   : > { %v515_v63 = vsel %vm477_vm0, %v433_v59, 0  ;;  %v488_v8 = vsel %vm477_vm0, %v424_v4, 0  ;;  %v407_v12 = vld [vmem:[%s1829_s12 + $0x80] sm:$0xff]  ;;  %v423_v14 = vpack.c.bf16 %v392_v11, %v391_v10  ;;  %v1029_v16 = vld [vmem:[%s2490_s8 + $0x70] sm:$0xff]  ;;  %v1030_v17 = vld [vmem:[%s2490_s8 + $0x78] sm:$0xff]  ;;  %s1571_s12 = sshll.u32 %s1786_s10, 1 }
  0x28   : > { %592 = vperm.xlu0 %1634, %v586_v20   ;;  %597 = vperm.xlu1 %1635, %v587_v21   ;;  %v512_v9 = vsel %vm477_vm0, %v432_v5, 0  ;;  %v431_v15 = vpack.c.bf16 %v408_v13, %v407_v12  ;;  %v1028_v20 = vld [vmem:[%s2490_s8 + $0x68] sm:$0xff]  ;;  %v1025_v21 = vld [vmem:[%s2490_s8 + $0x50] sm:$0xff]  ;;  %v1022_v25 = vld [vmem:[%s2490_s8 + $0x38] sm:$0xff]  ;;  %s1395_s13 = scalar_lea.hbm %s2493_s11, %s1571_s12  ;;  %s1385_s10 = scalar_lea.sflag [#allocation4], %s380_s23 }
  0x29   : > { %533 = vmatpush.bf16.xpose.msra.mxu0 %v503_v22  ;;  %552 = vmatpush.bf16.xpose.msra.mxu1 %v527_v23  ;;  %v485_v18 = vsel %vm477_vm0, %v423_v14, 0  ;;  %v1574_v22 = vld [vmem:[%s2483_s1] sm:$0xff]  ;;  %v1024_v24 = vld [vmem:[%s2490_s8 + $0x48] sm:$0xff]  ;;  %v1017_v28 = vld [vmem:[%s2490_s8 + $0x10] sm:$0xff]  ;;  %s1399_s16 = sshll.u32 %s1395_s13, 4  ;;  %s1400_s16 = int_to_ptr.hbm [resolvable:$true] %s1399_s16 }
  0x2a   : > { %v509_v19 = vsel %vm477_vm0, %v431_v15, 0  ;;  %v1023_v23 = vld [vmem:[%s2490_s8 + $0x40] sm:$0xff]  ;;  %v1575_v27 = vld [vmem:[%s2483_s1 + $0x8] sm:$0xff]  ;;  %v1018_v29 = vld [vmem:[%s2490_s8 + $0x18] sm:$0xff]  ;;  %s1651_s17 = sshra.s32 %s1400_s16, 4  ;;  %s1652_s17 = int_to_ptr.hbm [resolvable:$true] %s1651_s17 }
  0x2b   : > { %v1019_v26 = vld [vmem:[%s2490_s8 + $0x20] sm:$0xff]  ;;  %v707_v34 = vld [vmem:[%s2488_s6 + $0x70] sm:$0xff]  ;;  %v706_v35 = vld [vmem:[%s2488_s6 + $0x68] sm:$0xff]  ;;  %s1653_s18 = scalar_lea.hbm %s1652_s17, 2  ;;  %p1658_p0 = scmp.lt.s32.totalorder %s1652_s17, %s2493_s11 }
  0x2c   : > { %v701_v36 = vld [vmem:[%s2488_s6 + $0x40] sm:$0xff]  ;;  %v700_v39 = vld [vmem:[%s2488_s6 + $0x38] sm:$0xff]  ;;  %v694_v47 = vld [vmem:[%s2488_s6 + $0x8] sm:$0xff]  ;;  %p1654_p11 = scmp.ne.s32.totalorder %s1652_s17, %s1653_s18  ;;  %p1659_p1 = scmp.lt.s32.totalorder %s1657_s26, %s1653_s18 }
  0x2d   : > { %v1027_v4 = vld [vmem:[%s2490_s8 + $0x60] sm:$0xff]  ;;  %v1026_v10 = vld [vmem:[%s2490_s8 + $0x58] sm:$0xff]  ;;  %v1021_v11 = vld [vmem:[%s2490_s8 + $0x30] sm:$0xff] }
  0x2e   : > { %v1577_v12 = vld [vmem:[%s2485_s3 + $0x8] sm:$0xff]  ;;  %v1015_v14 = vld [vmem:[%s2490_s8] sm:$0xff]  ;;  %p1655_p12 = pnand %p1654_p11, %p1803_p5  ;;  %p1660_p2 = por %p1659_p1, %p1658_p0 }
  0x2f   : > { %v1020_v13 = vld [vmem:[%s2490_s8 + $0x28] sm:$0xff] }
  0x30   : > { %786 = vperm.xlu0 %1634, %v708_v30   ;;  %771 = vperm.xlu1 %1635, %v705_v31   ;;  %v1016_v30 = vld [vmem:[%s2490_s8 + $0x8] sm:$0xff]  ;;  %v1338_v31 = vld [vmem:[#allocation2] sm:$0x1]  ;;  %p1656_p13 = pneg %p1655_p12 }
  0x31   : > { %534 = vmatpush.bf16.xpose.msra.mxu0 %v500_v32  ;;  %553 = vmatpush.bf16.xpose.msra.mxu1 %v524_v33  ;;  %v588_v32 = vld [vmem:[%s2486_s4 + $0x10] sm:$0xff]  ;;  %v589_v33 = vld [vmem:[%s2486_s4 + $0x18] sm:$0xff] }
  0x32   : > { %602 = vperm.xlu2 %1636, %v588_v32   ;;  %p1661_p3 = pnand %p1660_p2, %p1656_p13 }
  0x38   : > { %761 = vperm.xlu0 %1634, %v703_v40   ;;  %766 = vperm.xlu1 %1635, %v704_v41  }
  0x39   : > { %535 = vmatpush.bf16.xpose.msra.mxu0 %v497_v42  ;;  %554 = vmatpush.bf16.xpose.msra.mxu1 %v521_v43  ;;  %v695_v42 = vld [vmem:[%s2488_s6 + $0x10] sm:$0xff] }
  0x3a   : > { %607 = vperm.xlu2 %1636, %v589_v33  }
  0x40   : > { %756 = vperm.xlu0 %1634, %v702_v50   ;;  %741 = vperm.xlu1 %1635, %v699_v51  }
  0x41   : > { %536 = vmatpush.bf16.xpose.msra.mxu0 %v494_v52  ;;  %555 = vmatpush.bf16.xpose.msra.mxu1 %v518_v53 }
  0x42   : > { %781 = vperm.xlu2 %1636, %v707_v34  }
  0x48   : > { %731 = vperm.xlu0 %1634, %v697_v60   ;;  %736 = vperm.xlu1 %1635, %v698_v61  }
  0x49   : > { %537 = vmatpush.bf16.xpose.msra.mxu0 %v491_v62  ;;  %556 = vmatpush.bf16.xpose.msra.mxu1 %v515_v63 }
  0x4a   : > { %776 = vperm.xlu2 %1636, %v706_v35  }
  0x50   : > { %726 = vperm.xlu0 %1634, %v696_v6   ;;  %711 = vperm.xlu1 %1635, %v693_v7  }
  0x51   : > { %538 = vmatpush.bf16.xpose.msra.mxu0 %v488_v8  ;;  %557 = vmatpush.bf16.xpose.msra.mxu1 %v512_v9  ;;  %v1576_v9 = vld [vmem:[%s2485_s3] sm:$0xff] }
  0x52   : > { %751 = vperm.xlu2 %1636, %v701_v36  }
  0x58   : > { %1103 = vperm.xlu0 %1634, %v1029_v16   ;;  %1108 = vperm.xlu1 %1635, %v1030_v17  }
  0x59   : > { %539 = vmatpush.bf16.xpose.msra.mxu0 %v485_v18  ;;  %558 = vmatpush.bf16.xpose.msra.mxu1 %v509_v19 }
  0x5a   : > { %746 = vperm.xlu2 %1636, %v700_v39  }
  0x60   : > { %1098 = vperm.xlu0 %1634, %v1028_v20   ;;  %1083 = vperm.xlu1 %1635, %v1025_v21  }
  0x61   : > { %1474 = vmatmul.msk.bf16.vlgmr.msra.gmra.mxu0 %vm477_vm0, %v1574_v22  ;;  %1476 = vmatmul.msk.bf16.vlgmr.msra.gmra.mxu1 %vm477_vm0, %v1574_v22 }
  0x62   : > { %721 = vperm.xlu2 %1636, %v695_v42  }
  0x68   : > { %1073 = vperm.xlu0 %1634, %v1023_v23   ;;  %1078 = vperm.xlu1 %1635, %v1024_v24  }
  0x6a   : > { %716 = vperm.xlu2 %1636, %v694_v47   ;;  %v1578_v47 = vld [vmem:[%s2487_s5] sm:$0xff] }
  0x70   : > { %1068 = vperm.xlu0 %1634, %v1022_v25   ;;  %1053 = vperm.xlu1 %1635, %v1019_v26  }
  0x71   : > { %1475 = vmatmul.msk.bf16.gmra.mxu0 %vm477_vm0, %v1575_v27  ;;  %1477 = vmatmul.msk.bf16.gmra.mxu1 %vm477_vm0, %v1575_v27 }
  0x72   : > { %1093 = vperm.xlu2 %1636, %v1027_v4  }
  0x78   : > { %1043 = vperm.xlu0 %1634, %v1017_v28   ;;  %1048 = vperm.xlu1 %1635, %v1018_v29  }
  0x7a   : > { %1088 = vperm.xlu2 %1636, %v1026_v10  }
  0x80   : > { %1038 = vperm.xlu0 %1634, %v1016_v30   ;;  %1341 = vperm.xlu1 %1635, %v1338_v31  }
  0x82   : > { %1063 = vperm.xlu2 %1636, %v1021_v11  }
  0x8a   : > { %v460_v43 = vpop.permute.xlu0 %459  ;;  %v450_v44 = vpop.permute.xlu1 %449  ;;  %1058 = vperm.xlu2 %1636, %v1020_v13  }
  0x8c   : > { %v603_v19 = vpop.permute.xlu2 %602 }
  0x92   : > { %v465_v48 = vpop.permute.xlu0 %464  ;;  %v455_v49 = vpop.permute.xlu1 %454  ;;  %1033 = vperm.xlu2 %1636, %v1015_v14  }
  0x94   : > { %v608_v23 = vpop.permute.xlu2 %607 }
  0x9a   : > { %v598_v22 = vpop.permute.xlu1 %597  ;;  %v593_v28 = vpop.permute.xlu0 %592 }
  0xde   : > { %v541_v37 = vpop.f32.mrf.mxu0  ;;  %v560_v38 = vpop.f32.mrf.mxu1 }
  0xdf   : > { %v542_v58 = vadd.f32 %v541_v37, %v450_v44  ;;  %v561_v59 = vadd.f32 %v560_v38, %v450_v44 }
  0xe1   : > { %v570_v5 = vmax.f32 %v542_v58, 0.0  ;;  %v571_v6 = vmax.f32 %v561_v59, 0.0 }
  0xe6   : > { %v543_v40 = vpop.f32.mrf.mxu0  ;;  %v562_v41 = vpop.f32.mrf.mxu1 }
  0xe7   : > { %v544_v54 = vadd.f32 %v543_v40, %v455_v49  ;;  %v563_v55 = vadd.f32 %v562_v41, %v455_v49  ;;  %v1580_v49 = vld [vmem:[%s2487_s5 + $0x10] sm:$0xff] }
  0xe9   : > { %v572_v0 = vmax.f32 %v544_v54, 0.0  ;;  %v573_v1 = vmax.f32 %v563_v55, 0.0  ;;  %v1585_v54 = vld [vmem:[%s2487_s5 + $0x38] sm:$0xff] }
  0xeb   : > { %v582_v7 = vpack.c.bf16 %v572_v0, %v570_v5  ;;  %v583_v8 = vpack.c.bf16 %v573_v1, %v571_v6 }
  0xee   : > { %v546_v45 = vpop.f32.mrf.mxu0  ;;  %v565_v46 = vpop.f32.mrf.mxu1 }
  0xef   : > { %v547_v50 = vadd.f32 %v546_v45, %v460_v43  ;;  %v566_v51 = vadd.f32 %v565_v46, %v460_v43 }
  0xf1   : > { %v574_v60 = vmax.f32 %v547_v50, 0.0  ;;  %v575_v61 = vmax.f32 %v566_v51, 0.0  ;;  %v1581_v50 = vld [vmem:[%s2487_s5 + $0x18] sm:$0xff]  ;;  %v1582_v51 = vld [vmem:[%s2487_s5 + $0x20] sm:$0xff] }
  0xf6   : > { %v548_v52 = vpop.f32.mrf.mxu0  ;;  %v567_v53 = vpop.f32.mrf.mxu1 }
  0xf7   : > { %v549_v56 = vadd.f32 %v548_v52, %v465_v48  ;;  %v568_v57 = vadd.f32 %v567_v53, %v465_v48  ;;  %v1579_v48 = vld [vmem:[%s2487_s5 + $0x8] sm:$0xff]  ;;  %v1584_v53 = vld [vmem:[%s2487_s5 + $0x30] sm:$0xff] }
  0xf8   : > { %v1583_v52 = vld [vmem:[%s2487_s5 + $0x28] sm:$0xff] }
  0xf9   : > { %v576_v62 = vmax.f32 %v549_v56, 0.0  ;;  %v577_v63 = vmax.f32 %v568_v57, 0.0 }
  0xfb   : > { %v584_v2 = vpack.c.bf16 %v576_v62, %v574_v60  ;;  %v585_v3 = vpack.c.bf16 %v577_v63, %v575_v61 }
  0xfd   : > { %633 = vmatpush.bf16.msra.mxu2 %v584_v2  ;;  %652 = vmatpush.bf16.msra.mxu3 %v585_v3 }
 0x101   : > { %634 = vmatpush.bf16.msra.mxu2 %v582_v7  ;;  %653 = vmatpush.bf16.msra.mxu3 %v583_v8 }
 0x104   : > { %1486 = vmatmul.msk.bf16.vlgmr.msra.gmra.mxu2 %vm620_vm1, %v1576_v9  ;;  %1488 = vmatmul.msk.bf16.vlgmr.msra.gmra.mxu3 %vm620_vm1, %v1576_v9 }
 0x114   : > { %1487 = vmatmul.msk.bf16.gmra.mxu2 %vm620_vm1, %v1577_v12  ;;  %1489 = vmatmul.msk.bf16.gmra.mxu3 %vm620_vm1, %v1577_v12 }
 0x187   : > { %v636_v15 = vpop.f32.mrf.mxu2  ;;  %v655_v16 = vpop.f32.mrf.mxu3 }
 0x188   : > { %v637_v33 = vadd.f32 %v636_v15, %v593_v28  ;;  %v656_v34 = vadd.f32 %v655_v16, %v593_v28  ;;  %v782_v15 = vpop.permute.xlu2 %781 }
 0x18a   : > { %v665_v43 = vmax.f32 %v637_v33, 0.0  ;;  %v666_v44 = vmax.f32 %v656_v34, 0.0 }
 0x18f   : > { %v638_v17 = vpop.f32.mrf.mxu2  ;;  %v657_v18 = vpop.f32.mrf.mxu3 }
 0x190   : > { %v639_v29 = vadd.f32 %v638_v17, %v598_v22  ;;  %v658_v30 = vadd.f32 %v657_v18, %v598_v22  ;;  %v787_v18 = vpop.permute.xlu0 %786  ;;  %v772_v22 = vpop.permute.xlu1 %771 }
 0x192   : > { %v667_v39 = vmax.f32 %v639_v29, 0.0  ;;  %v668_v40 = vmax.f32 %v658_v30, 0.0 }
 0x194   : > { %v689_v45 = vpack.c.bf16 %v667_v39, %v665_v43  ;;  %v690_v46 = vpack.c.bf16 %v668_v40, %v666_v44 }
 0x197   : > { %v641_v20 = vpop.f32.mrf.mxu2  ;;  %v660_v21 = vpop.f32.mrf.mxu3 }
 0x198   : > { %v642_v24 = vadd.f32 %v641_v20, %v603_v19  ;;  %v661_v25 = vadd.f32 %v660_v21, %v603_v19  ;;  %v777_v19 = vpop.permute.xlu2 %776 }
 0x19a   : > { %v669_v35 = vmax.f32 %v642_v24, 0.0  ;;  %v670_v36 = vmax.f32 %v661_v25, 0.0 }
 0x19f   : > { %v643_v26 = vpop.f32.mrf.mxu2  ;;  %v662_v27 = vpop.f32.mrf.mxu3 }
 0x1a0   : > { %v644_v31 = vadd.f32 %v643_v26, %v608_v23  ;;  %v663_v32 = vadd.f32 %v662_v27, %v608_v23  ;;  %v762_v23 = vpop.permute.xlu0 %761  ;;  %v752_v26 = vpop.permute.xlu2 %751 }
 0x1a1   : > { %v767_v27 = vpop.permute.xlu1 %766 }
 0x1a2   : > { %v671_v37 = vmax.f32 %v644_v31, 0.0  ;;  %v672_v38 = vmax.f32 %v663_v32, 0.0 }
 0x1a4   : > { %v691_v41 = vpack.c.bf16 %v671_v37, %v669_v35  ;;  %v692_v42 = vpack.c.bf16 %v672_v38, %v670_v36 }
 0x1a6   : > { %859 = vmatpush.bf16.msrb.mxu2 %v691_v41  ;;  %908 = vmatpush.bf16.msrb.mxu3 %v692_v42 }
 0x1a8   : > { %v757_v28 = vpop.permute.xlu0 %756  ;;  %v747_v39 = vpop.permute.xlu2 %746 }
 0x1aa   : > { %860 = vmatpush.bf16.msrb.mxu2 %v689_v45  ;;  %909 = vmatpush.bf16.msrb.mxu3 %v690_v46  ;;  %v742_v46 = vpop.permute.xlu1 %741 }
 0x1ad   : > { %1522 = vmatmul.msk.bf16.vlgmr.msrb.gmra.mxu2 %vm620_vm1, %v1578_v47  ;;  %1530 = vmatmul.msk.bf16.vlgmr.msrb.gmra.mxu3 %vm620_vm1, %v1578_v47 }
 0x1bd   : > { %1523 = vmatmul.msk.bf16.gmra.mxu2 %vm620_vm1, %v1579_v48  ;;  %1531 = vmatmul.msk.bf16.gmra.mxu3 %vm620_vm1, %v1579_v48 }
 0x1cd   : > { %1524 = vmatmul.msk.bf16.gmra.mxu2 %vm620_vm1, %v1580_v49  ;;  %1532 = vmatmul.msk.bf16.gmra.mxu3 %vm620_vm1, %v1580_v49 }
 0x1dd   : > { %1525 = vmatmul.msk.bf16.gmra.mxu2 %vm620_vm1, %v1581_v50  ;;  %1533 = vmatmul.msk.bf16.gmra.mxu3 %vm620_vm1, %v1581_v50 }
 0x1ed   : > { %1526 = vmatmul.msk.bf16.gmra.mxu2 %vm620_vm1, %v1582_v51  ;;  %1534 = vmatmul.msk.bf16.gmra.mxu3 %vm620_vm1, %v1582_v51 }
 0x1fd   : > { %1527 = vmatmul.msk.bf16.gmra.mxu2 %vm620_vm1, %v1583_v52  ;;  %1535 = vmatmul.msk.bf16.gmra.mxu3 %vm620_vm1, %v1583_v52 }
 0x20d   : > { %1528 = vmatmul.msk.bf16.gmra.mxu2 %vm620_vm1, %v1584_v53  ;;  %1536 = vmatmul.msk.bf16.gmra.mxu3 %vm620_vm1, %v1584_v53 }
 0x21d   : > { %1529 = vmatmul.msk.bf16.gmra.mxu2 %vm620_vm1, %v1585_v54  ;;  %1537 = vmatmul.msk.bf16.gmra.mxu3 %vm620_vm1, %v1585_v54 }
 0x230   : > { %v2047_v55 = vpop.f32.mrf.mxu2  ;;  %v2049_v56 = vpop.f32.mrf.mxu3 }
 0x238   : > { %v2051_v57 = vpop.f32.mrf.mxu2  ;;  %v2053_v58 = vpop.f32.mrf.mxu3 }
 0x240   : > { %v2055_v59 = vpop.f32.mrf.mxu2  ;;  %v2057_v60 = vpop.f32.mrf.mxu3 }
 0x248   : > { %v2059_v61 = vpop.f32.mrf.mxu2  ;;  %v2061_v62 = vpop.f32.mrf.mxu3 }
 0x250   : > { %v2063_v63 = vpop.f32.mrf.mxu2  ;;  %v2065_v0 = vpop.f32.mrf.mxu3 }
 0x258   : > { %v2067_v1 = vpop.f32.mrf.mxu2  ;;  %v2069_v2 = vpop.f32.mrf.mxu3 }
 0x260   : > { %v2071_v3 = vpop.f32.mrf.mxu2  ;;  %v2073_v4 = vpop.f32.mrf.mxu3 }
 0x268   : > { %v2075_v5 = vpop.f32.mrf.mxu2  ;;  %v2077_v6 = vpop.f32.mrf.mxu3 }
 0x270   : > { %v882_v7 = vpop.f32.mrf.mxu2  ;;  %v931_v8 = vpop.f32.mrf.mxu3 }
 0x278   : > { %v884_v9 = vpop.f32.mrf.mxu2  ;;  %v933_v10 = vpop.f32.mrf.mxu3 }
 0x280   : > { %v887_v11 = vpop.f32.mrf.mxu2  ;;  %v936_v12 = vpop.f32.mrf.mxu3 }
 0x281   : > { %v2113_v51 = vadd.f32 %v887_v11, %v762_v23  ;;  %v2115_v52 = vadd.f32 %v936_v12, %v762_v23 }
 0x288   : > { %v889_v13 = vpop.f32.mrf.mxu2  ;;  %v938_v14 = vpop.f32.mrf.mxu3 }
 0x289   : > { %v2099_v44 = vadd.f32 %v889_v13, %v767_v27  ;;  %v2101_v45 = vadd.f32 %v938_v14, %v767_v27  ;;  %v2119_v13 = vadd.f32 %v884_v9, %v757_v28  ;;  %v2121_v14 = vadd.f32 %v933_v10, %v757_v28 }
 0x28a   : > { %v2135_v9 = vadd.f32 %v931_v8, %v752_v26  ;;  %v2499_v10 = vmax.f32 %v2113_v51, 0.0 }
 0x28b   : > { %v2497_v23 = vmax.f32 %v2119_v13, 0.0 }
 0x28c   : > { %v2494_v27 = vmax.f32 %v2135_v9, 0.0 }
 0x290   : > { %v892_v16 = vpop.f32.mrf.mxu2  ;;  %v941_v17 = vpop.f32.mrf.mxu3 }
 0x291   : > { %v2091_v37 = vadd.f32 %v892_v16, %v772_v22  ;;  %v2093_v38 = vadd.f32 %v941_v17, %v772_v22  ;;  %v2501_v16 = vmax.f32 %v2099_v44, 0.0  ;;  %v2500_v17 = vmax.f32 %v2101_v45, 0.0  ;;  %v722_v22 = vpop.permute.xlu2 %721 }
 0x293   : > { %v2503_v53 = vmax.f32 %v2091_v37, 0.0  ;;  %v2502_v54 = vmax.f32 %v2093_v38, 0.0  ;;  %v1009_v8 = vpack.c.bf16 %v2501_v16, %v2499_v10 }
 0x298   : > { %v894_v20 = vpop.f32.mrf.mxu2  ;;  %v943_v21 = vpop.f32.mrf.mxu3 }
 0x299   : > { %v2083_v33 = vadd.f32 %v894_v20, %v777_v19  ;;  %v2085_v34 = vadd.f32 %v943_v21, %v777_v19  ;;  %v2498_v19 = vmax.f32 %v2115_v52, 0.0  ;;  %v2140_v20 = vadd.f32 %v2075_v5, %v747_v39  ;;  %v737_v5 = vpop.permute.xlu1 %736 }
 0x29a   : > { %v2143_v21 = vadd.f32 %v2077_v6, %v747_v39  ;;  %v2159_v6 = vadd.f32 %v2073_v4, %v742_v46  ;;  %v2164_v28 = vadd.f32 %v2067_v1, %v737_v5 }
 0x29b   : > { %v2505_v47 = vmax.f32 %v2083_v33, 0.0  ;;  %v2504_v48 = vmax.f32 %v2085_v34, 0.0 }
 0x29d   : > { %v1011_v11 = vpack.c.bf16 %v2505_v47, %v2503_v53  ;;  %v1012_v12 = vpack.c.bf16 %v2504_v48, %v2502_v54 }
 0x2a0   : > { %v897_v24 = vpop.f32.mrf.mxu2  ;;  %v946_v25 = vpop.f32.mrf.mxu3 }
 0x2a1   : > { %v2079_v29 = vadd.f32 %v897_v24, %v782_v15  ;;  %v2081_v30 = vadd.f32 %v946_v25, %v782_v15  ;;  %v732_v15 = vpop.permute.xlu0 %731  ;;  %v1010_v24 = vpack.c.bf16 %v2500_v17, %v2498_v19  ;;  %v2156_v25 = vadd.f32 %v2071_v3, %v742_v46  ;;  %v1586_v19 = vld [vmem:[%s2489_s7] sm:$0xff] }
 0x2a2   : > { %v2510_v3 = vmax.f32 %v2143_v21, 0.0  ;;  %v2180_v1 = vadd.f32 %v2063_v63, %v732_v15 }
 0x2a3   : > { %v2509_v40 = vmax.f32 %v2079_v29, 0.0  ;;  %v2508_v41 = vmax.f32 %v2081_v30, 0.0 }
 0x2a8   : > { %v899_v31 = vpop.f32.mrf.mxu2  ;;  %v948_v32 = vpop.f32.mrf.mxu3 }
 0x2a9   : > { %v2087_v35 = vadd.f32 %v899_v31, %v787_v18  ;;  %v2089_v36 = vadd.f32 %v948_v32, %v787_v18  ;;  %v2133_v18 = vadd.f32 %v882_v7, %v752_v26  ;;  %v2496_v7 = vmax.f32 %v2121_v14, 0.0  ;;  %v727_v46 = vpop.permute.xlu0 %726 }
 0x2aa   : > { %v2167_v31 = vadd.f32 %v2069_v2, %v737_v5  ;;  %v2511_v32 = vmax.f32 %v2140_v20, 0.0  ;;  %v2183_v2 = vadd.f32 %v2065_v0, %v732_v15  ;;  %v2517_v5 = vmax.f32 %v2180_v1, 0.0 }
 0x2ab   : > { %v2507_v42 = vmax.f32 %v2087_v35, 0.0  ;;  %v2506_v43 = vmax.f32 %v2089_v36, 0.0  ;;  %v2495_v26 = vmax.f32 %v2133_v18, 0.0  ;;  %v1008_v39 = vpack.c.bf16 %v2496_v7, %v2494_v27 }
 0x2ac   : > { %v2514_v63 = vmax.f32 %v2167_v31, 0.0 }
 0x2ad   : > { %v1013_v49 = vpack.c.bf16 %v2507_v42, %v2509_v40  ;;  %v1014_v50 = vpack.c.bf16 %v2506_v43, %v2508_v41  ;;  %v1007_v4 = vpack.c.bf16 %v2497_v23, %v2495_v26 }
 0x2af   : > { %1159 = vmatpush.bf16.msrb.mxu0 %v1013_v49  ;;  %1208 = vmatpush.bf16.msrb.mxu1 %v1014_v50  ;;  %v2513_v49 = vmax.f32 %v2156_v25, 0.0  ;;  %v2512_v50 = vmax.f32 %v2159_v6, 0.0 }
 0x2b1   : > { %v1005_v0 = vpack.c.bf16 %v2511_v32, %v2513_v49  ;;  %v1006_v15 = vpack.c.bf16 %v2510_v3, %v2512_v50 }
 0x2b3   : > { %1160 = vmatpush.bf16.msrb.mxu0 %v1011_v11  ;;  %1209 = vmatpush.bf16.msrb.mxu1 %v1012_v12  ;;  %v2188_v11 = vadd.f32 %v2059_v61, %v727_v46  ;;  %v2191_v12 = vadd.f32 %v2061_v62, %v727_v46  ;;  %v2204_v61 = vadd.f32 %v2055_v59, %v722_v22 }
 0x2b4   : > { %v2207_v62 = vadd.f32 %v2057_v60, %v722_v22 }
 0x2b5   : > { %v2519_v27 = vmax.f32 %v2188_v11, 0.0  ;;  %v2518_v59 = vmax.f32 %v2191_v12, 0.0 }
 0x2b7   : > { %1161 = vmatpush.bf16.msrb.mxu0 %v1009_v8  ;;  %1210 = vmatpush.bf16.msrb.mxu1 %v1010_v24  ;;  %v2515_v8 = vmax.f32 %v2164_v28, 0.0  ;;  %v717_v24 = vpop.permute.xlu2 %716 }
 0x2b8   : > { %v2215_v46 = vadd.f32 %v2053_v58, %v717_v24 }
 0x2b9   : > { %v1003_v60 = vpack.c.bf16 %v2515_v8, %v2517_v5 }
 0x2ba   : > { %v954_v7 = vmax.f32 %v2215_v46, 0.0  ;;  %v2530_v46 = vmax.f32 %v2204_v61, 0.0 }
 0x2bb   : > { %1162 = vmatpush.bf16.msrb.mxu0 %v1007_v4  ;;  %1211 = vmatpush.bf16.msrb.mxu1 %v1008_v39  ;;  %v2516_v4 = vmax.f32 %v2183_v2, 0.0  ;;  %v2212_v39 = vadd.f32 %v2051_v57, %v717_v24  ;;  %v2520_v24 = vmax.f32 %v2207_v62, 0.0 }
 0x2bd   : > { %v1004_v22 = vpack.c.bf16 %v2514_v63, %v2516_v4  ;;  %v953_v26 = vmax.f32 %v2212_v39, 0.0 }
 0x2bf   : > { %1163 = vmatpush.bf16.msrb.mxu0 %v1005_v0  ;;  %1212 = vmatpush.bf16.msrb.mxu1 %v1006_v15  ;;  %v712_v0 = vpop.permute.xlu1 %711  ;;  %v2521_v15 = vmax.f32 %v2204_v61, 0.0 }
 0x2c0   : > { %v2228_v57 = vadd.f32 %v2047_v55, %v712_v0  ;;  %v2231_v58 = vadd.f32 %v2049_v56, %v712_v0  ;;  %v1002_v55 = vpack.c.bf16 %v2518_v59, %v2520_v24 }
 0x2c1   : > { %v1001_v23 = vpack.c.bf16 %v2519_v27, %v2521_v15 }
 0x2c2   : > { %v951_v56 = vmax.f32 %v2228_v57, 0.0  ;;  %v952_v0 = vmax.f32 %v2231_v58, 0.0  ;;  %v1587_v57 = vld [vmem:[%s2489_s7 + $0x8] sm:$0xff]  ;;  %v1589_v58 = vld [vmem:[%s2489_s7 + $0x18] sm:$0xff] }
 0x2c3   : > { %1164 = vmatpush.bf16.msrb.mxu0 %v1003_v60  ;;  %1213 = vmatpush.bf16.msrb.mxu1 %v1004_v22 }
 0x2c4   : > { %v999_v60 = vpack.c.bf16 %v953_v26, %v951_v56  ;;  %v1000_v22 = vpack.c.bf16 %v954_v7, %v952_v0 }
 0x2c7   : > { %1165 = vmatpush.bf16.msrb.mxu0 %v1001_v23  ;;  %1214 = vmatpush.bf16.msrb.mxu1 %v1002_v55  ;;  %v1588_v23 = vld [vmem:[%s2489_s7 + $0x10] sm:$0xff]  ;;  %v1591_v55 = vld [vmem:[%s2489_s7 + $0x28] sm:$0xff]  ;;  %v2282_v10 = vpop.permute.xlu1 %1108 }
 0x2cb   : > { %1166 = vmatpush.bf16.msrb.mxu0 %v999_v60  ;;  %1215 = vmatpush.bf16.msrb.mxu1 %v1000_v22  ;;  %v2269_v60 = vpop.permute.xlu0 %1103  ;;  %v2271_v22 = vpop.permute.xlu2 %1093 }
 0x2ce   : > { %1167 = vmatmul.bf16.vlgmr.msrb.gmra.mxu0 %v1586_v19  ;;  %1216 = vmatmul.bf16.vlgmr.msrb.gmra.mxu1 %v1586_v19  ;;  %v1590_v19 = vld [vmem:[%s2489_s7 + $0x20] sm:$0xff] }
 0x2cf   : > { %v2291_v54 = vpop.permute.xlu1 %1083 }
 0x2d7   : > { %v2293_v43 = vpop.permute.xlu1 %1078 }
 0x2de   : > { %1172 = vmatmul.bf16.gmra.mxu0 %v1587_v57  ;;  %1221 = vmatmul.bf16.gmra.mxu1 %v1587_v57  ;;  %v2273_v57 = vpop.permute.xlu0 %1098 }
 0x2df   : > { %v1054_v59 = vpop.permute.xlu1 %1053 }
 0x2ee   : > { %1177 = vmatmul.bf16.gmra.mxu0 %v1588_v23  ;;  %1226 = vmatmul.bf16.gmra.mxu1 %v1588_v23  ;;  %v1592_v23 = vld [vmem:[%s2489_s7 + $0x30] sm:$0xff] }
 0x2fe   : > { %1182 = vmatmul.bf16.gmra.mxu0 %v1589_v58  ;;  %1231 = vmatmul.bf16.gmra.mxu1 %v1589_v58  ;;  %v2278_v58 = vpop.permute.xlu2 %1088 }
 0x306   : > { %v2287_v17 = vpop.permute.xlu2 %1063 }
 0x30e   : > { %1187 = vmatmul.bf16.gmra.mxu0 %v1590_v19  ;;  %1236 = vmatmul.bf16.gmra.mxu1 %v1590_v19  ;;  %v2280_v19 = vpop.permute.xlu0 %1073  ;;  %v1059_v53 = vpop.permute.xlu2 %1058 }
 0x316   : > { %v2289_v16 = vpop.permute.xlu0 %1068  ;;  %v1034_v42 = vpop.permute.xlu2 %1033 }
 0x31e   : > { %1192 = vmatmul.bf16.gmra.mxu0 %v1591_v55  ;;  %1241 = vmatmul.bf16.gmra.mxu1 %v1591_v55  ;;  %v1593_v55 = vld [vmem:[%s2489_s7 + $0x38] sm:$0xff] }
 0x32e   : > { %1197 = vmatmul.bf16.gmra.mxu0 %v1592_v23  ;;  %1246 = vmatmul.bf16.gmra.mxu1 %v1592_v23  ;;  %v1044_v23 = vpop.permute.xlu0 %1043 }
 0x336   : > { %v1039_v3 = vpop.permute.xlu0 %1038 }
 0x33e   : > { %1202 = vmatmul.bf16.gmra.mxu0 %v1593_v55  ;;  %1251 = vmatmul.bf16.gmra.mxu1 %v1593_v55 }
 0x34b   : > { %v1168_v48 = vpop.f32.mrf.mxu0  ;;  %v1217_v47 = vpop.f32.mrf.mxu1 }
 0x34c   : > { %v1169_v41 = vadd.f32 %v1168_v48, %v1034_v42  ;;  %v1218_v40 = vadd.f32 %v1217_v47, %v1034_v42 }
 0x34e   : > { %v1257_v49 = vmax.f32 %v1169_v41, 0.0  ;;  %v1258_v63 = vmax.f32 %v1218_v40, 0.0  ;;  %v2536_v41 = vmax.f32 %v2164_v28, 0.0 }
 0x350   : > { %v2295_v27 = vadd.f32 %v1257_v49, %v951_v56  ;;  %v2297_v24 = vadd.f32 %v1258_v63, %v952_v0  ;;  %v1049_v49 = vpop.permute.xlu1 %1048  ;;  %v2531_v0 = vmax.f32 %v2207_v62, 0.0 }
 0x352   : > { %2527 = vst [vmem:[#allocation6_spill] sm:$0xff] %v2295_v27 }
 0x353   : > { %v1170_v32 = vpop.f32.mrf.mxu0  ;;  %v1219_v50 = vpop.f32.mrf.mxu1  ;;  %2528 = vst [vmem:[#allocation7_spill] sm:$0xff] %v2297_v24 }
 0x354   : > { %v1171_v8 = vadd.f32 %v1170_v32, %v1039_v3  ;;  %v1220_v4 = vadd.f32 %v1219_v50, %v1039_v3 }
 0x356   : > { %v1259_v5 = vmax.f32 %v1171_v8, 0.0  ;;  %v1260_v55 = vmax.f32 %v1220_v4, 0.0 }
 0x358   : > { %v2301_v15 = vadd.f32 %v1259_v5, %v953_v26  ;;  %v2305_v42 = vadd.f32 %v1260_v55, %v954_v7 }
 0x35a   : > { %2529 = vst [vmem:[#allocation8_spill] sm:$0xff] %v2305_v42 }
 0x35b   : > { %v1173_v47 = vpop.f32.mrf.mxu0  ;;  %v1222_v48 = vpop.f32.mrf.mxu1 }
 0x35c   : > { %v1174_v32 = vadd.f32 %v1173_v47, %v1044_v23  ;;  %v1223_v3 = vadd.f32 %v1222_v48, %v1044_v23  ;;  %v2532_v47 = vmax.f32 %v2188_v11, 0.0  ;;  %v2533_v48 = vmax.f32 %v2191_v12, 0.0 }
 0x35e   : > { %v1261_v63 = vmax.f32 %v1174_v32, 0.0  ;;  %v1262_v26 = vmax.f32 %v1223_v3, 0.0 }
 0x360   : > { %v2313_v56 = vadd.f32 %v1261_v63, %v2530_v46  ;;  %v2317_v55 = vadd.f32 %v1262_v26, %v2531_v0 }
 0x363   : > { %v1175_v50 = vpop.f32.mrf.mxu0  ;;  %v1224_v8 = vpop.f32.mrf.mxu1 }
 0x364   : > { %v1176_v5 = vadd.f32 %v1175_v50, %v1049_v49  ;;  %v1225_v4 = vadd.f32 %v1224_v8, %v1049_v49 }
 0x366   : > { %v1263_v39 = vmax.f32 %v1176_v5, 0.0  ;;  %v1264_v7 = vmax.f32 %v1225_v4, 0.0 }
 0x368   : > { %v2321_v23 = vadd.f32 %v1263_v39, %v2532_v47  ;;  %v2325_v32 = vadd.f32 %v1264_v7, %v2533_v48  ;;  %v2534_v7 = vmax.f32 %v2180_v1, 0.0  ;;  %v2535_v47 = vmax.f32 %v2183_v2, 0.0 }
 0x36b   : > { %v1178_v49 = vpop.f32.mrf.mxu0  ;;  %v1227_v50 = vpop.f32.mrf.mxu1 }
 0x36c   : > { %v1179_v8 = vadd.f32 %v1178_v49, %v1054_v59  ;;  %v1228_v62 = vadd.f32 %v1227_v50, %v1054_v59  ;;  %v2537_v59 = vmax.f32 %v2167_v31, 0.0 }
 0x36e   : > { %v1265_v5 = vmax.f32 %v1179_v8, 0.0  ;;  %v1266_v11 = vmax.f32 %v1228_v62, 0.0 }
 0x370   : > { %v2333_v0 = vadd.f32 %v1265_v5, %v2534_v7  ;;  %v2337_v48 = vadd.f32 %v1266_v11, %v2535_v47  ;;  %v2539_v7 = vmax.f32 %v2159_v6, 0.0 }
 0x373   : > { %v1180_v63 = vpop.f32.mrf.mxu0  ;;  %v1229_v26 = vpop.f32.mrf.mxu1 }
 0x374   : > { %v1181_v4 = vadd.f32 %v1180_v63, %v1059_v53  ;;  %v1230_v39 = vadd.f32 %v1229_v26, %v1059_v53 }
 0x376   : > { %v1267_v46 = vmax.f32 %v1181_v4, 0.0  ;;  %v1268_v12 = vmax.f32 %v1230_v39, 0.0 }
 0x378   : > { %v2341_v49 = vadd.f32 %v1267_v46, %v2536_v41  ;;  %v2345_v50 = vadd.f32 %v1268_v12, %v2537_v59  ;;  %v2538_v46 = vmax.f32 %v2156_v25, 0.0 }
 0x37b   : > { %v1183_v8 = vpop.f32.mrf.mxu0  ;;  %v1232_v62 = vpop.f32.mrf.mxu1 }
 0x37c   : > { %v1184_v2 = vadd.f32 %v1183_v8, %v2287_v17  ;;  %v1233_v63 = vadd.f32 %v1232_v62, %v2287_v17  ;;  %v2540_v17 = vmax.f32 %v2140_v20, 0.0  ;;  %v2541_v8 = vmax.f32 %v2143_v21, 0.0 }
 0x37e   : > { %v1269_v41 = vmax.f32 %v1184_v2, 0.0  ;;  %v1270_v5 = vmax.f32 %v1233_v63, 0.0 }
 0x380   : > { %v2357_v12 = vadd.f32 %v1269_v41, %v2538_v46  ;;  %v2361_v47 = vadd.f32 %v1270_v5, %v2539_v7 }
 0x383   : > { %v1185_v26 = vpop.f32.mrf.mxu0  ;;  %v1234_v28 = vpop.f32.mrf.mxu1 }
 0x384   : > { %v1186_v31 = vadd.f32 %v1185_v26, %v2289_v16  ;;  %v1235_v11 = vadd.f32 %v1234_v28, %v2289_v16 }
 0x386   : > { %v1271_v4 = vmax.f32 %v1186_v31, 0.0  ;;  %v1272_v39 = vmax.f32 %v1235_v11, 0.0 }
 0x388   : > { %v2365_v59 = vadd.f32 %v1271_v4, %v2540_v17  ;;  %v2369_v62 = vadd.f32 %v1272_v39, %v2541_v8 }
 0x38b   : > { %v1188_v2 = vpop.f32.mrf.mxu0  ;;  %v1237_v63 = vpop.f32.mrf.mxu1 }
 0x393   : > { %v1190_v26 = vpop.f32.mrf.mxu0  ;;  %v1239_v6 = vpop.f32.mrf.mxu1 }
 0x39b   : > { %v1193_v28 = vpop.f32.mrf.mxu0  ;;  %v1242_v41 = vpop.f32.mrf.mxu1 }
 0x3a3   : > { %v1195_v5 = vpop.f32.mrf.mxu0  ;;  %v1244_v20 = vpop.f32.mrf.mxu1 }
 0x3ab   : > { %v1198_v31 = vpop.f32.mrf.mxu0  ;;  %v1247_v11 = vpop.f32.mrf.mxu1 }
 0x3ac   : > { %v1199_v61 = vadd.f32 %v1198_v31, %v2271_v22  ;;  %v1248_v3 = vadd.f32 %v1247_v11, %v2271_v22  ;;  %v1194_v31 = vadd.f32 %v1193_v28, %v2291_v54  ;;  %v1243_v22 = vadd.f32 %v1242_v41, %v2291_v54 }
 0x3ae   : > { %v1281_v11 = vmax.f32 %v1199_v61, 0.0  ;;  %v1278_v41 = vmax.f32 %v1243_v22, 0.0  ;;  %v2554_v22 = vmax.f32 %v2119_v13, 0.0  ;;  %v2558_v13 = vpack.c.bf16 %v2365_v59, %v2357_v12  ;;  %v2564_v59 = vld [vmem:[#allocation6_spill] sm:$0xff] }
 0x3af   : > { %v2563_v12 = vpack.c.bf16 %v2325_v32, %v2317_v55 }
 0x3b3   : > { %v1200_v4 = vpop.f32.mrf.mxu0  ;;  %v1249_v21 = vpop.f32.mrf.mxu1 }
 0x3b4   : > { %v1201_v8 = vadd.f32 %v1200_v4, %v2273_v57  ;;  %v1250_v40 = vadd.f32 %v1249_v21, %v2273_v57  ;;  %v1282_v21 = vmax.f32 %v1248_v3, 0.0  ;;  %v2546_v3 = vmax.f32 %v2083_v33, 0.0 }
 0x3b6   : > { %v1284_v4 = vmax.f32 %v1250_v40, 0.0 }
 0x3bb   : > { %v1203_v39 = vpop.f32.mrf.mxu0  ;;  %v1252_v46 = vpop.f32.mrf.mxu1 }
 0x3bc   : > { %v1204_v7 = vadd.f32 %v1203_v39, %v2269_v60  ;;  %v1253_v17 = vadd.f32 %v1252_v46, %v2269_v60  ;;  %v1196_v39 = vadd.f32 %v1195_v5, %v2278_v58  ;;  %v1245_v60 = vadd.f32 %v1244_v20, %v2278_v58 }
 0x3bd   : > { %v1283_v46 = vmax.f32 %v1201_v8, 0.0  ;;  %v2545_v58 = vmax.f32 %v2089_v36, 0.0  ;;  %v1277_v36 = vmax.f32 %v1194_v31, 0.0 }
 0x3be   : > { %v1285_v25 = vmax.f32 %v1204_v7, 0.0  ;;  %v1286_v16 = vmax.f32 %v1253_v17, 0.0  ;;  %v2542_v7 = vmax.f32 %v2079_v29, 0.0  ;;  %v1279_v28 = vmax.f32 %v1196_v39, 0.0 }
 0x3bf   : > { %v1280_v54 = vmax.f32 %v1245_v60, 0.0  ;;  %v1315_v61 = vadd.f32 %v1283_v46, %v2546_v3  ;;  %v2547_v29 = vmax.f32 %v2085_v34, 0.0  ;;  %v2550_v34 = vmax.f32 %v2099_v44, 0.0 }
 0x3c0   : > { %v1317_v17 = vadd.f32 %v1285_v25, %v2542_v7  ;;  %v2551_v60 = vmax.f32 %v2101_v45, 0.0  ;;  %v2555_v44 = vmax.f32 %v2121_v14, 0.0  ;;  %v2559_v14 = vpack.c.bf16 %v2369_v62, %v2361_v47  ;;  %v2566_v62 = vld [vmem:[#allocation8_spill] sm:$0xff] }
 0x3c1   : > { %v1316_v25 = vadd.f32 %v1284_v4, %v2547_v29  ;;  %v1311_v39 = vadd.f32 %v1279_v28, %v2550_v34  ;;  %v2565_v47 = vpack.c.bf16 %v2301_v15, %v2564_v59 }
 0x3c3   : > { %v1205_v1 = vpop.f32.mrf.mxu0  ;;  %v1254_v53 = vpop.f32.mrf.mxu1 }
 0x3c4   : > { %v1206_v24 = vadd.f32 %v1205_v1, %v2282_v10  ;;  %v1255_v42 = vadd.f32 %v1254_v53, %v2282_v10  ;;  %v2543_v1 = vmax.f32 %v2081_v30, 0.0  ;;  %v2544_v53 = vmax.f32 %v2087_v35, 0.0 }
 0x3c5   : > { %v1189_v35 = vadd.f32 %v1188_v2, %v2280_v19  ;;  %v1312_v2 = vadd.f32 %v1280_v54, %v2551_v60 }
 0x3c6   : > { %v1287_v27 = vmax.f32 %v1206_v24, 0.0  ;;  %v1288_v57 = vmax.f32 %v1255_v42, 0.0  ;;  %v1318_v10 = vadd.f32 %v1286_v16, %v2543_v1  ;;  %v1191_v24 = vadd.f32 %v1190_v26, %v2293_v43 }
 0x3c7   : > { %v1240_v42 = vadd.f32 %v1239_v6, %v2293_v43  ;;  %v2548_v26 = vmax.f32 %v2091_v37, 0.0  ;;  %v2549_v43 = vmax.f32 %v2093_v38, 0.0  ;;  %v2552_v37 = vmax.f32 %v2113_v51, 0.0 }
 0x3c8   : > { %v1319_v5 = vadd.f32 %v1287_v27, %v2544_v53  ;;  %v1320_v40 = vadd.f32 %v1288_v57, %v2545_v58  ;;  %v1238_v27 = vadd.f32 %v1237_v63, %v2280_v19  ;;  %v1275_v33 = vmax.f32 %v1191_v24, 0.0  ;;  %v2567_v58 = vld [vmem:[#allocation7_spill] sm:$0xff] }
 0x3c9   : > { %v1313_v20 = vadd.f32 %v1281_v11, %v2548_v26  ;;  %v1314_v6 = vadd.f32 %v1282_v21, %v2549_v43  ;;  %v1276_v8 = vmax.f32 %v1240_v42, 0.0  ;;  %v1273_v63 = vmax.f32 %v1189_v35, 0.0 }
 0x3ca   : > { %v1336_v30 = vpack.c.bf16 %v1319_v5, %v1317_v17  ;;  %v1337_v16 = vpack.c.bf16 %v1320_v40, %v1318_v10  ;;  %v1274_v4 = vmax.f32 %v1238_v27, 0.0  ;;  %v1309_v57 = vadd.f32 %v1277_v36, %v2552_v37 }
 0x3cb   : > { %v1334_v46 = vpack.c.bf16 %v1315_v61, %v1313_v20  ;;  %v1335_v19 = vpack.c.bf16 %v1316_v25, %v1314_v6  ;;  %v2553_v38 = vmax.f32 %v2115_v52, 0.0  ;;  %v1307_v11 = vadd.f32 %v1275_v33, %v2554_v22 }
 0x3cc   : > { %1345 = vmatpush.bf16.msra.mxu2 %v1336_v30  ;;  %1358 = vmatpush.bf16.msra.mxu3 %v1337_v16  ;;  %v1308_v21 = vadd.f32 %v1276_v8, %v2555_v44  ;;  %v1332_v45 = vpack.c.bf16 %v1311_v39, %v1309_v57  ;;  %v2556_v17 = vmax.f32 %v2133_v18, 0.0  ;;  %v2557_v10 = vmax.f32 %v2135_v9, 0.0 }
 0x3cd   : > { %v1310_v31 = vadd.f32 %v1278_v41, %v2553_v38  ;;  %v2560_v18 = vpack.c.bf16 %v2341_v49, %v2333_v0  ;;  %v2561_v9 = vpack.c.bf16 %v2345_v50, %v2337_v48  ;;  %v2562_v5 = vpack.c.bf16 %v2321_v23, %v2313_v56  ;;  %v1321_v48 = vld [vmem:[%s2491_s9] sm:$0x1]  ;;  %v1342_v56 = vpop.permute.xlu1 %1341 }
 0x3ce   : > { %v1305_v1 = vadd.f32 %v1273_v63, %v2556_v17  ;;  %v1306_v51 = vadd.f32 %v1274_v4, %v2557_v10  ;;  %v2568_v0 = vpack.c.bf16 %v2566_v62, %v2567_v58  ;;  %v1344_v55 = vperm.slane %v1342_v56, 0 }
 0x3cf   : > { %v1333_v7 = vpack.c.bf16 %v1312_v2, %v1310_v31  ;;  %v1379_v50 = vlaneseq }
 0x3d0   : > { %1346 = vmatpush.bf16.msra.mxu2 %v1334_v46  ;;  %1359 = vmatpush.bf16.msra.mxu3 %v1335_v19  ;;  %v1330_v52 = vpack.c.bf16 %v1307_v11, %v1305_v1  ;;  %v1331_v53 = vpack.c.bf16 %v1308_v21, %v1306_v51 }
 0x3d1   : > { %vm1381_vm3 = vcmp.lt.s32.totalorder %v1379_v50, 256 }
 0x3d4   : > { %1347 = vmatpush.bf16.msra.mxu2 %v1332_v45  ;;  %1360 = vmatpush.bf16.msra.mxu3 %v1333_v7 }
 0x3d8   : > { %1348 = vmatpush.bf16.msra.mxu2 %v1330_v52  ;;  %1361 = vmatpush.bf16.msra.mxu3 %v1331_v53 }
 0x3dc   : > { %1349 = vmatpush.bf16.msra.mxu2 %v2558_v13  ;;  %1362 = vmatpush.bf16.msra.mxu3 %v2559_v14 }
 0x3e0   : > { %1350 = vmatpush.bf16.msra.mxu2 %v2560_v18  ;;  %1363 = vmatpush.bf16.msra.mxu3 %v2561_v9 }
 0x3e4   : > { %1351 = vmatpush.bf16.msra.mxu2 %v2562_v5  ;;  %1364 = vmatpush.bf16.msra.mxu3 %v2563_v12 }
 0x3e8   : > { %1352 = vmatpush.bf16.msra.mxu2 %v2565_v47  ;;  %1365 = vmatpush.bf16.msra.mxu3 %v2568_v0 }
 0x3eb   : > { %1353 = vmatmul.bf16.vlgmr.msra.gmra.mxu2 %v1321_v48  ;;  %1366 = vmatmul.bf16.vlgmr.msra.gmra.mxu3 %v1321_v48 }
 0x46e   : > { %v1354_v23 = vpop.f32.mrf.mxu2  ;;  %v1367_v32 = vpop.f32.mrf.mxu3 }
 0x46f   : > { %v1355_v15 = vadd.f32 %v1354_v23, %v1344_v55  ;;  %v1368_v49 = vadd.f32 %v1367_v32, %v1344_v55 }
 0x471   : > { %v1372_v40 = vmul.f32 2.5, %v1368_v49  ;;  %v1371_v24 = vmul.f32 2.5, %v1355_v15 }
 0x473   : > { %v1375_v42 = vrot.slane %v1372_v40, 7 }
 0x475   : > { %v1377_v28 = vsel %vm1376_vm2, %v1371_v24, %v1375_v42 }
 0x476   : > { %v1369_v54 = vpop.f32.mrf.mxu3  ;;  %v1356_v3 = vpop.f32.mrf.mxu2  ;;  %1383 = vst.msk [vmem:[%s382_s14] sm:$0x3] %vm1381_vm3, %v1377_v28 }
 0x477   : > { %1664 = shalt.err (!%p1661_p3)
}
 0x478   : > { %1594 = dma.vmem_to_hbm [thread:$0]  (%p1803_p5), %s1398_s15, 32, %s1400_s16, %s1385_s10  }
 0x479 PF: > { %p1600_p4 = scmp.ge.s32.totalorder %s1699_s22, 2  ;;  %s1411_s23 = sand.u32 1, %s1687_s19  }
 0x47a   : > { %s1412_s14 = scalar_lea.sflag [#allocation4], %s1411_s23 }
 0x47b   : > { %p1597_p7 = pnand %p1600_p4, %p1807_p6 }
 0x47d   : > { %p1598_p8 = pneg %p1597_p7 }
 0x47f   : > { %1682 = dma.done.wait (%p1598_p8), %s1412_s14, 32  }
 0x480   : > { %1684 = vsyncadd (%p1598_p8), %s1412_s14, 4294967264  ;;  %p23_p9 = scmp.ge.s32.totalorder %s1790_s24, 4   ;;  %s2569_s19 = smov %s1691_s20 }
 0x481   : > { %s2570_s20 = smov %s1695_s21  ;;  %s2571_s21 = smov %s1801_s27 }
 0x482   : > { %s2572_s22 = smov %s1790_s24  ;;  %25 = sbr.rel (!%p23_p9) target bundleno = 6 (0x6), region = 99 }
 0x487   :  { %1418 = vsyncpa [#allocation4], 1 }
 0x488   :  { %1420 = vsyncpa [#allocation4 + $0x1], 1 }

</bundles_post_ra>
